<compile_context>
chip_gen: v5e
topology: v5e:2x2
jax: 0.10.0
libtpu: 0.0.40
codegen_flags: <defaults>
</compile_context>

<pallas_src>
import jax
import jax.numpy as jnp
from jax import lax
from jax.experimental import pallas as pl
from jax.experimental.pallas import tpu as pltpu


def _round_up(x, m):
    return (x + m - 1) // m * m


def mlp_pool_ffn_kernel(tok_ref, msk_ref,                        # (TB, L) int32 VMEM blocks
                        table_ref, w1_ref, b1_ref, w2_ref, b2_ref,   # grid-invariant VMEM blocks
                        out_ref):                                # (TB, C_P) f32 VMEM output
    tb = out_ref.shape[0]
    seq_len = tok_ref.shape[1]
    v_p, d_p = table_ref.shape

    toks = tok_ref[...]                 # (TB, L) int32
    msks = msk_ref[...]                 # (TB, L) int32
    table = table_ref[...]              # (V_P, D_P) f32, VMEM-resident

    # Hoisted constant: vocab iota broadcast over the batch tile.
    vocab_iota = lax.broadcasted_iota(jnp.int32, (tb, v_p), 1)

    # Running max kept entirely in vregs (no VMEM round-trip per iteration).
    # -inf init + "-10000 for masked positions" exactly reproduces
    # masked_fill(..., -10000).max(dim=1)  (every row has L >= 1 contributions).
    pooled = jnp.full((tb, d_p), -jnp.inf, dtype=jnp.float32)

    # Static unroll over the (small) sequence length: each step is one
    # (TB, V_P) @ (V_P, D_P) MXU matmul + one vselect + one vmax.
    for l in range(seq_len):
        tok_col = toks[:, l:l + 1]                                  # (TB, 1) int32
        msk_col = msks[:, l:l + 1]                                  # (TB, 1) int32
        one_hot = (tok_col == vocab_iota).astype(jnp.float32)       # (TB, V_P)
        emb = jnp.dot(one_hot, table, preferred_element_type=jnp.float32)   # (TB, D_P)
        masked = jnp.where(msk_col == 1, emb, jnp.float32(-10000.0))        # exact masked_fill
        pooled = jnp.maximum(pooled, masked)

    # ffn: Linear(D, D) -> ReLU -> Dropout(eval: identity) -> Linear(D, C)
    h = jnp.dot(pooled, w1_ref[...], preferred_element_type=jnp.float32) + b1_ref[...]
    h = jnp.maximum(h, 0.0)
    out_ref[...] = jnp.dot(h, w2_ref[...], preferred_element_type=jnp.float32) + b2_ref[...]


def make_mlp_forward(emb_table, w1, b1, w2, b2, *, tb=None):
    """Pads parameters ONCE and returns a jitted forward(tokens, aspect_mask) -> {'pred': ...}."""
    V, D = emb_table.shape
    C = w2.shape[1]

    # Lane-dense / sublane-friendly padding (done once, outside the per-call path).
    D_P = _round_up(D, 128)
    C_P = _round_up(C, 128)
    V_P = _round_up(V, 128)     # V_P is both the one-hot lane dim and the MXU contraction dim

    f32 = jnp.float32
    table_p = jnp.zeros((V_P, D_P), f32).at[:V, :D].set(jnp.asarray(emb_table, f32))
    w1_p = jnp.zeros((D_P, D_P), f32).at[:D, :D].set(jnp.asarray(w1, f32))
    b1_p = jnp.zeros((1, D_P), f32).at[:, :D].set(jnp.asarray(b1, f32).reshape(1, D))
    w2_p = jnp.zeros((D_P, C_P), f32).at[:D, :C].set(jnp.asarray(w2, f32))
    b2_p = jnp.zeros((1, C_P), f32).at[:, :C].set(jnp.asarray(b2, f32).reshape(1, C))

    def forward(tokens, aspect_mask):
        B, L = tokens.shape

        # Batch tile: fill the 256x256 MXU on v6e/v7x when the batch allows,
        # 128 otherwise (v5e-natural), >= 8 sublanes minimum.
        if tb is not None:
            TB = tb
        elif B >= 256:
            TB = 256
        elif B >= 128:
            TB = 128
        else:
            TB = _round_up(B, 8)
        B_P = _round_up(B, TB)
        n_tiles = B_P // TB

        tok_p = jnp.zeros((B_P, L), jnp.int32).at[:B].set(tokens.astype(jnp.int32))
        msk_p = jnp.zeros((B_P, L), jnp.int32).at[:B].set(aspect_mask.astype(jnp.int32))

        # VMEM budget from the actual resident set (inputs double-buffered by default).
        bytes_f32 = 4
        resident = 2 * bytes_f32 * (
            V_P * D_P + D_P * D_P + 8 * D_P + D_P * C_P + 8 * C_P      # table + weights + biases
            + 2 * TB * _round_up(L, 128)                               # token / mask tiles
            + TB * C_P                                                 # output tile
        )
        vmem_bytes = min(max(int(resident * 1.5) + (4 << 20), 32 << 20), 100 << 20)

        grid_spec = pltpu.PrefetchScalarGridSpec(
            num_scalar_prefetch=0,
            grid=(n_tiles,),
            in_specs=[
                # Per-tile token / aspect-mask blocks (VMEM, no SMEM padding blow-up).
                pl.BlockSpec((TB, L), lambda i: (i, 0)),
                pl.BlockSpec((TB, L), lambda i: (i, 0)),
                # Grid-invariant blocks: constant index_map -> DMA'd once, VMEM-resident.
                pl.BlockSpec((V_P, D_P), lambda i: (0, 0)),   # embedding table
                pl.BlockSpec((D_P, D_P), lambda i: (0, 0)),   # w1
                pl.BlockSpec((1, D_P), lambda i: (0, 0)),     # b1
                pl.BlockSpec((D_P, C_P), lambda i: (0, 0)),   # w2
                pl.BlockSpec((1, C_P), lambda i: (0, 0)),     # b2
            ],
            out_specs=pl.BlockSpec((TB, C_P), lambda i: (i, 0)),
        )

        preds_padded = pl.pallas_call(
            mlp_pool_ffn_kernel,
            out_shape=jax.ShapeDtypeStruct((B_P, C_P), jnp.float32),
            grid_spec=grid_spec,
            compiler_params=pltpu.CompilerParams(
                dimension_semantics=("parallel",),   # batch tiles -> v7x megacore
                vmem_limit_bytes=vmem_bytes,
            ),
        )(tok_p, msk_p, table_p, w1_p, b1_p, w2_p, b2_p)

        return {"pred": preds_padded[:B, :C]}

    return jax.jit(forward)


if __name__ == "__main__":
    B, L, D, C, VOCAB = 2, 8, 32, 3, 50   # batch, max_len, embed_size, num_classes, vocab

    key = jax.random.PRNGKey(0)
    k_emb, k_w1, k_b1, k_w2, k_b2, k_tok, k_msk = jax.random.split(key, 7)

    # Deterministic parameter init (shapes follow nn.Embedding / nn.Linear in __init__).
    emb_table = jax.random.normal(k_emb, (VOCAB, D), dtype=jnp.float32) * 0.1
    w1 = jax.random.normal(k_w1, (D, D), dtype=jnp.float32) * 0.1        # Linear(embed, embed)
    b1 = jax.random.normal(k_b1, (1, D), dtype=jnp.float32) * 0.01
    w2 = jax.random.normal(k_w2, (D, C), dtype=jnp.float32) * 0.1        # Linear(embed, num_classes)
    b2 = jax.random.normal(k_b2, (1, C), dtype=jnp.float32) * 0.01

    # Inputs: token ids and aspect mask (1 marks aspect tokens).
    tokens = jax.random.randint(k_tok, (B, L), 2, VOCAB, dtype=jnp.int32)
    aspect_mask = (jax.random.uniform(k_msk, (B, L)) > 0.5).astype(jnp.int32)
    aspect_mask = aspect_mask.at[:, 0].set(1)   # ensure at least one aspect token per row

    forward = make_mlp_forward(emb_table, w1, b1, w2, b2)
    out = forward(tokens, aspect_mask)
    preds = jax.block_until_ready(out["pred"])

    # Cross-check against a pure-JAX reference of the same forward.
    embedded = jnp.take(emb_table, tokens, axis=0)
    filled = jnp.where((aspect_mask == 1)[:, :, None], embedded, -10000.0)
    pooled = filled.max(axis=1)
    ref = jnp.maximum(pooled @ w1 + b1, 0.0) @ w2 + b2
    assert preds.shape == (B, C)
    assert jnp.allclose(preds, ref, atol=1e-4, rtol=1e-4)

    print("KERNEL_OK")
</pallas_src>

<mosaic_0001>
module attributes {stable_mosaic.version = 11 : i64} {
  func.func @mlp_pool_ffn_kernel(%arg0: i32, %arg1: memref<8x8xi32, #tpu.memory_space<vmem>>, %arg2: memref<8x8xi32, #tpu.memory_space<vmem>>, %arg3: memref<128x128xf32, #tpu.memory_space<vmem>>, %arg4: memref<128x128xf32, #tpu.memory_space<vmem>>, %arg5: memref<1x128xf32, #tpu.memory_space<vmem>>, %arg6: memref<128x128xf32, #tpu.memory_space<vmem>>, %arg7: memref<1x128xf32, #tpu.memory_space<vmem>>, %arg8: memref<8x128xf32, #tpu.memory_space<vmem>>) attributes {dimension_semantics = [#tpu.dimension_semantics<parallel>], iteration_bounds = array<i64: 1>, scalar_prefetch = 0 : i64, scratch_operands = 0 : i64, tpu.core_type = #tpu.core_type<tc>, window_params = [{transform_indices = @transform_0, window_bounds = array<i64: 8, 8>}, {transform_indices = @transform_1, window_bounds = array<i64: 8, 8>}, {pipeline_mode = #tpu.pipeline_mode<synchronous>, transform_indices = @transform_2, window_bounds = array<i64: 128, 128>}, {pipeline_mode = #tpu.pipeline_mode<synchronous>, transform_indices = @transform_3, window_bounds = array<i64: 128, 128>}, {pipeline_mode = #tpu.pipeline_mode<synchronous>, transform_indices = @transform_4, window_bounds = array<i64: 1, 128>}, {pipeline_mode = #tpu.pipeline_mode<synchronous>, transform_indices = @transform_5, window_bounds = array<i64: 128, 128>}, {pipeline_mode = #tpu.pipeline_mode<synchronous>, transform_indices = @transform_6, window_bounds = array<i64: 1, 128>}, {transform_indices = @transform_7, window_bounds = array<i64: 8, 128>}]} {
    %c0 = arith.constant 0 : index
    %c0_0 = arith.constant 0 : index
    %0 = vector.load %arg1[%c0, %c0_0] : memref<8x8xi32, #tpu.memory_space<vmem>>, vector<8x8xi32>
    %c0_1 = arith.constant 0 : index
    %c0_2 = arith.constant 0 : index
    %1 = vector.load %arg2[%c0_1, %c0_2] : memref<8x8xi32, #tpu.memory_space<vmem>>, vector<8x8xi32>
    %c0_3 = arith.constant 0 : index
    %c0_4 = arith.constant 0 : index
    %2 = vector.load %arg3[%c0_3, %c0_4] : memref<128x128xf32, #tpu.memory_space<vmem>>, vector<128x128xf32>
    %3 = tpu.iota {dimensions = array<i32: 1>} : vector<8x128xi32>
    %cst = arith.constant 0xFF800000 : f32
    %4 = vector.broadcast %cst : f32 to vector<8x128xf32>
    %5 = vector.extract_strided_slice %0 {offsets = [0, 0], sizes = [8, 1], strides = [1, 1]} : vector<8x8xi32> to vector<8x1xi32>
    %6 = vector.extract_strided_slice %1 {offsets = [0, 0], sizes = [8, 1], strides = [1, 1]} : vector<8x8xi32> to vector<8x1xi32>
    %7 = vector.broadcast %5 : vector<8x1xi32> to vector<8x128xi32>
    %8 = arith.cmpi eq, %7, %3 : vector<8x128xi32>
    %9 = arith.extui %8 : vector<8x128xi1> to vector<8x128xi32>
    %10 = arith.sitofp %9 : vector<8x128xi32> to vector<8x128xf32>
    %cst_5 = arith.constant dense<0.000000e+00> : vector<8x128xf32>
    %11 = tpu.matmul %10, %2, %cst_5 {dimension_numbers = #tpu.dot_dimension_numbers<[1], [0], [0], [1], [0, 0, 1, 1], [], []>} : vector<8x128xf32>, vector<128x128xf32>, vector<8x128xf32> -> vector<8x128xf32>
    %c1_i32 = arith.constant 1 : i32
    %12 = vector.broadcast %c1_i32 : i32 to vector<8x1xi32>
    %13 = arith.cmpi eq, %6, %12 : vector<8x1xi32>
    %cst_6 = arith.constant -1.000000e+04 : f32
    %14 = vector.shape_cast %13 : vector<8x1xi1> to vector<8x1xi1>
    %15 = vector.broadcast %14 : vector<8x1xi1> to vector<8x128xi1>
    %16 = vector.broadcast %cst_6 : f32 to vector<8x128xf32>
    %17 = arith.select %15, %11, %16 : vector<8x128xi1>, vector<8x128xf32>
    %18 = arith.maximumf %4, %17 : vector<8x128xf32>
    %19 = vector.extract_strided_slice %0 {offsets = [0, 1], sizes = [8, 1], strides = [1, 1]} : vector<8x8xi32> to vector<8x1xi32>
    %20 = vector.extract_strided_slice %1 {offsets = [0, 1], sizes = [8, 1], strides = [1, 1]} : vector<8x8xi32> to vector<8x1xi32>
    %21 = vector.broadcast %19 : vector<8x1xi32> to vector<8x128xi32>
    %22 = arith.cmpi eq, %21, %3 : vector<8x128xi32>
    %23 = arith.extui %22 : vector<8x128xi1> to vector<8x128xi32>
    %24 = arith.sitofp %23 : vector<8x128xi32> to vector<8x128xf32>
    %cst_7 = arith.constant dense<0.000000e+00> : vector<8x128xf32>
    %25 = tpu.matmul %24, %2, %cst_7 {dimension_numbers = #tpu.dot_dimension_numbers<[1], [0], [0], [1], [0, 0, 1, 1], [], []>} : vector<8x128xf32>, vector<128x128xf32>, vector<8x128xf32> -> vector<8x128xf32>
    %c1_i32_8 = arith.constant 1 : i32
    %26 = vector.broadcast %c1_i32_8 : i32 to vector<8x1xi32>
    %27 = arith.cmpi eq, %20, %26 : vector<8x1xi32>
    %cst_9 = arith.constant -1.000000e+04 : f32
    %28 = vector.shape_cast %27 : vector<8x1xi1> to vector<8x1xi1>
    %29 = vector.broadcast %28 : vector<8x1xi1> to vector<8x128xi1>
    %30 = vector.broadcast %cst_9 : f32 to vector<8x128xf32>
    %31 = arith.select %29, %25, %30 : vector<8x128xi1>, vector<8x128xf32>
    %32 = arith.maximumf %18, %31 : vector<8x128xf32>
    %33 = vector.extract_strided_slice %0 {offsets = [0, 2], sizes = [8, 1], strides = [1, 1]} : vector<8x8xi32> to vector<8x1xi32>
    %34 = vector.extract_strided_slice %1 {offsets = [0, 2], sizes = [8, 1], strides = [1, 1]} : vector<8x8xi32> to vector<8x1xi32>
    %35 = vector.broadcast %33 : vector<8x1xi32> to vector<8x128xi32>
    %36 = arith.cmpi eq, %35, %3 : vector<8x128xi32>
    %37 = arith.extui %36 : vector<8x128xi1> to vector<8x128xi32>
    %38 = arith.sitofp %37 : vector<8x128xi32> to vector<8x128xf32>
    %cst_10 = arith.constant dense<0.000000e+00> : vector<8x128xf32>
    %39 = tpu.matmul %38, %2, %cst_10 {dimension_numbers = #tpu.dot_dimension_numbers<[1], [0], [0], [1], [0, 0, 1, 1], [], []>} : vector<8x128xf32>, vector<128x128xf32>, vector<8x128xf32> -> vector<8x128xf32>
    %c1_i32_11 = arith.constant 1 : i32
    %40 = vector.broadcast %c1_i32_11 : i32 to vector<8x1xi32>
    %41 = arith.cmpi eq, %34, %40 : vector<8x1xi32>
    %cst_12 = arith.constant -1.000000e+04 : f32
    %42 = vector.shape_cast %41 : vector<8x1xi1> to vector<8x1xi1>
    %43 = vector.broadcast %42 : vector<8x1xi1> to vector<8x128xi1>
    %44 = vector.broadcast %cst_12 : f32 to vector<8x128xf32>
    %45 = arith.select %43, %39, %44 : vector<8x128xi1>, vector<8x128xf32>
    %46 = arith.maximumf %32, %45 : vector<8x128xf32>
    %47 = vector.extract_strided_slice %0 {offsets = [0, 3], sizes = [8, 1], strides = [1, 1]} : vector<8x8xi32> to vector<8x1xi32>
    %48 = vector.extract_strided_slice %1 {offsets = [0, 3], sizes = [8, 1], strides = [1, 1]} : vector<8x8xi32> to vector<8x1xi32>
    %49 = vector.broadcast %47 : vector<8x1xi32> to vector<8x128xi32>
    %50 = arith.cmpi eq, %49, %3 : vector<8x128xi32>
    %51 = arith.extui %50 : vector<8x128xi1> to vector<8x128xi32>
    %52 = arith.sitofp %51 : vector<8x128xi32> to vector<8x128xf32>
    %cst_13 = arith.constant dense<0.000000e+00> : vector<8x128xf32>
    %53 = tpu.matmul %52, %2, %cst_13 {dimension_numbers = #tpu.dot_dimension_numbers<[1], [0], [0], [1], [0, 0, 1, 1], [], []>} : vector<8x128xf32>, vector<128x128xf32>, vector<8x128xf32> -> vector<8x128xf32>
    %c1_i32_14 = arith.constant 1 : i32
    %54 = vector.broadcast %c1_i32_14 : i32 to vector<8x1xi32>
    %55 = arith.cmpi eq, %48, %54 : vector<8x1xi32>
    %cst_15 = arith.constant -1.000000e+04 : f32
    %56 = vector.shape_cast %55 : vector<8x1xi1> to vector<8x1xi1>
    %57 = vector.broadcast %56 : vector<8x1xi1> to vector<8x128xi1>
    %58 = vector.broadcast %cst_15 : f32 to vector<8x128xf32>
    %59 = arith.select %57, %53, %58 : vector<8x128xi1>, vector<8x128xf32>
    %60 = arith.maximumf %46, %59 : vector<8x128xf32>
    %61 = vector.extract_strided_slice %0 {offsets = [0, 4], sizes = [8, 1], strides = [1, 1]} : vector<8x8xi32> to vector<8x1xi32>
    %62 = vector.extract_strided_slice %1 {offsets = [0, 4], sizes = [8, 1], strides = [1, 1]} : vector<8x8xi32> to vector<8x1xi32>
    %63 = vector.broadcast %61 : vector<8x1xi32> to vector<8x128xi32>
    %64 = arith.cmpi eq, %63, %3 : vector<8x128xi32>
    %65 = arith.extui %64 : vector<8x128xi1> to vector<8x128xi32>
    %66 = arith.sitofp %65 : vector<8x128xi32> to vector<8x128xf32>
    %cst_16 = arith.constant dense<0.000000e+00> : vector<8x128xf32>
    %67 = tpu.matmul %66, %2, %cst_16 {dimension_numbers = #tpu.dot_dimension_numbers<[1], [0], [0], [1], [0, 0, 1, 1], [], []>} : vector<8x128xf32>, vector<128x128xf32>, vector<8x128xf32> -> vector<8x128xf32>
    %c1_i32_17 = arith.constant 1 : i32
    %68 = vector.broadcast %c1_i32_17 : i32 to vector<8x1xi32>
    %69 = arith.cmpi eq, %62, %68 : vector<8x1xi32>
    %cst_18 = arith.constant -1.000000e+04 : f32
    %70 = vector.shape_cast %69 : vector<8x1xi1> to vector<8x1xi1>
    %71 = vector.broadcast %70 : vector<8x1xi1> to vector<8x128xi1>
    %72 = vector.broadcast %cst_18 : f32 to vector<8x128xf32>
    %73 = arith.select %71, %67, %72 : vector<8x128xi1>, vector<8x128xf32>
    %74 = arith.maximumf %60, %73 : vector<8x128xf32>
    %75 = vector.extract_strided_slice %0 {offsets = [0, 5], sizes = [8, 1], strides = [1, 1]} : vector<8x8xi32> to vector<8x1xi32>
    %76 = vector.extract_strided_slice %1 {offsets = [0, 5], sizes = [8, 1], strides = [1, 1]} : vector<8x8xi32> to vector<8x1xi32>
    %77 = vector.broadcast %75 : vector<8x1xi32> to vector<8x128xi32>
    %78 = arith.cmpi eq, %77, %3 : vector<8x128xi32>
    %79 = arith.extui %78 : vector<8x128xi1> to vector<8x128xi32>
    %80 = arith.sitofp %79 : vector<8x128xi32> to vector<8x128xf32>
    %cst_19 = arith.constant dense<0.000000e+00> : vector<8x128xf32>
    %81 = tpu.matmul %80, %2, %cst_19 {dimension_numbers = #tpu.dot_dimension_numbers<[1], [0], [0], [1], [0, 0, 1, 1], [], []>} : vector<8x128xf32>, vector<128x128xf32>, vector<8x128xf32> -> vector<8x128xf32>
    %c1_i32_20 = arith.constant 1 : i32
    %82 = vector.broadcast %c1_i32_20 : i32 to vector<8x1xi32>
    %83 = arith.cmpi eq, %76, %82 : vector<8x1xi32>
    %cst_21 = arith.constant -1.000000e+04 : f32
    %84 = vector.shape_cast %83 : vector<8x1xi1> to vector<8x1xi1>
    %85 = vector.broadcast %84 : vector<8x1xi1> to vector<8x128xi1>
    %86 = vector.broadcast %cst_21 : f32 to vector<8x128xf32>
    %87 = arith.select %85, %81, %86 : vector<8x128xi1>, vector<8x128xf32>
    %88 = arith.maximumf %74, %87 : vector<8x128xf32>
    %89 = vector.extract_strided_slice %0 {offsets = [0, 6], sizes = [8, 1], strides = [1, 1]} : vector<8x8xi32> to vector<8x1xi32>
    %90 = vector.extract_strided_slice %1 {offsets = [0, 6], sizes = [8, 1], strides = [1, 1]} : vector<8x8xi32> to vector<8x1xi32>
    %91 = vector.broadcast %89 : vector<8x1xi32> to vector<8x128xi32>
    %92 = arith.cmpi eq, %91, %3 : vector<8x128xi32>
    %93 = arith.extui %92 : vector<8x128xi1> to vector<8x128xi32>
    %94 = arith.sitofp %93 : vector<8x128xi32> to vector<8x128xf32>
    %cst_22 = arith.constant dense<0.000000e+00> : vector<8x128xf32>
    %95 = tpu.matmul %94, %2, %cst_22 {dimension_numbers = #tpu.dot_dimension_numbers<[1], [0], [0], [1], [0, 0, 1, 1], [], []>} : vector<8x128xf32>, vector<128x128xf32>, vector<8x128xf32> -> vector<8x128xf32>
    %c1_i32_23 = arith.constant 1 : i32
    %96 = vector.broadcast %c1_i32_23 : i32 to vector<8x1xi32>
    %97 = arith.cmpi eq, %90, %96 : vector<8x1xi32>
    %cst_24 = arith.constant -1.000000e+04 : f32
    %98 = vector.shape_cast %97 : vector<8x1xi1> to vector<8x1xi1>
    %99 = vector.broadcast %98 : vector<8x1xi1> to vector<8x128xi1>
    %100 = vector.broadcast %cst_24 : f32 to vector<8x128xf32>
    %101 = arith.select %99, %95, %100 : vector<8x128xi1>, vector<8x128xf32>
    %102 = arith.maximumf %88, %101 : vector<8x128xf32>
    %103 = vector.extract_strided_slice %0 {offsets = [0, 7], sizes = [8, 1], strides = [1, 1]} : vector<8x8xi32> to vector<8x1xi32>
    %104 = vector.extract_strided_slice %1 {offsets = [0, 7], sizes = [8, 1], strides = [1, 1]} : vector<8x8xi32> to vector<8x1xi32>
    %105 = vector.broadcast %103 : vector<8x1xi32> to vector<8x128xi32>
    %106 = arith.cmpi eq, %105, %3 : vector<8x128xi32>
    %107 = arith.extui %106 : vector<8x128xi1> to vector<8x128xi32>
    %108 = arith.sitofp %107 : vector<8x128xi32> to vector<8x128xf32>
    %cst_25 = arith.constant dense<0.000000e+00> : vector<8x128xf32>
    %109 = tpu.matmul %108, %2, %cst_25 {dimension_numbers = #tpu.dot_dimension_numbers<[1], [0], [0], [1], [0, 0, 1, 1], [], []>} : vector<8x128xf32>, vector<128x128xf32>, vector<8x128xf32> -> vector<8x128xf32>
    %c1_i32_26 = arith.constant 1 : i32
    %110 = vector.broadcast %c1_i32_26 : i32 to vector<8x1xi32>
    %111 = arith.cmpi eq, %104, %110 : vector<8x1xi32>
    %cst_27 = arith.constant -1.000000e+04 : f32
    %112 = vector.shape_cast %111 : vector<8x1xi1> to vector<8x1xi1>
    %113 = vector.broadcast %112 : vector<8x1xi1> to vector<8x128xi1>
    %114 = vector.broadcast %cst_27 : f32 to vector<8x128xf32>
    %115 = arith.select %113, %109, %114 : vector<8x128xi1>, vector<8x128xf32>
    %116 = arith.maximumf %102, %115 : vector<8x128xf32>
    %c0_28 = arith.constant 0 : index
    %c0_29 = arith.constant 0 : index
    %117 = vector.load %arg4[%c0_28, %c0_29] : memref<128x128xf32, #tpu.memory_space<vmem>>, vector<128x128xf32>
    %cst_30 = arith.constant dense<0.000000e+00> : vector<8x128xf32>
    %118 = tpu.matmul %116, %117, %cst_30 {dimension_numbers = #tpu.dot_dimension_numbers<[1], [0], [0], [1], [0, 0, 1, 1], [], []>} : vector<8x128xf32>, vector<128x128xf32>, vector<8x128xf32> -> vector<8x128xf32>
    %c0_31 = arith.constant 0 : index
    %c0_32 = arith.constant 0 : index
    %119 = vector.load %arg5[%c0_31, %c0_32] : memref<1x128xf32, #tpu.memory_space<vmem>>, vector<1x128xf32>
    %120 = vector.broadcast %119 : vector<1x128xf32> to vector<8x128xf32>
    %121 = arith.addf %118, %120 : vector<8x128xf32>
    %cst_33 = arith.constant 0.000000e+00 : f32
    %122 = vector.broadcast %cst_33 : f32 to vector<8x128xf32>
    %123 = arith.maximumf %121, %122 : vector<8x128xf32>
    %c0_34 = arith.constant 0 : index
    %c0_35 = arith.constant 0 : index
    %124 = vector.load %arg6[%c0_34, %c0_35] : memref<128x128xf32, #tpu.memory_space<vmem>>, vector<128x128xf32>
    %cst_36 = arith.constant dense<0.000000e+00> : vector<8x128xf32>
    %125 = tpu.matmul %123, %124, %cst_36 {dimension_numbers = #tpu.dot_dimension_numbers<[1], [0], [0], [1], [0, 0, 1, 1], [], []>} : vector<8x128xf32>, vector<128x128xf32>, vector<8x128xf32> -> vector<8x128xf32>
    %c0_37 = arith.constant 0 : index
    %c0_38 = arith.constant 0 : index
    %126 = vector.load %arg7[%c0_37, %c0_38] : memref<1x128xf32, #tpu.memory_space<vmem>>, vector<1x128xf32>
    %127 = vector.broadcast %126 : vector<1x128xf32> to vector<8x128xf32>
    %128 = arith.addf %125, %127 : vector<8x128xf32>
    %c0_39 = arith.constant 0 : index
    %c0_40 = arith.constant 0 : index
    %129 = vector.load %arg8[%c0_39, %c0_40] : memref<8x128xf32, #tpu.memory_space<vmem>>, vector<8x128xf32>
    tpu.vector_store %arg8[%c0_39, %c0_40], %128 {strides = array<i32>} : memref<8x128xf32, #tpu.memory_space<vmem>>, vector<8x128xf32>,
    return
  }
  func.func @transform_0(%arg0: i32) -> (i32, i32) {
    %c0_i32 = arith.constant 0 : i32
    %c0_i32_0 = arith.constant 0 : i32
    return %arg0, %c0_i32 : i32, i32
  }
  func.func @transform_1(%arg0: i32) -> (i32, i32) {
    %c0_i32 = arith.constant 0 : i32
    %c0_i32_0 = arith.constant 0 : i32
    return %arg0, %c0_i32 : i32, i32
  }
  func.func @transform_2(%arg0: i32) -> (i32, i32) {
    %c0_i32 = arith.constant 0 : i32
    %c0_i32_0 = arith.constant 0 : i32
    %c0_i32_1 = arith.constant 0 : i32
    return %c0_i32, %c0_i32_0 : i32, i32
  }
  func.func @transform_3(%arg0: i32) -> (i32, i32) {
    %c0_i32 = arith.constant 0 : i32
    %c0_i32_0 = arith.constant 0 : i32
    %c0_i32_1 = arith.constant 0 : i32
    return %c0_i32, %c0_i32_0 : i32, i32
  }
  func.func @transform_4(%arg0: i32) -> (i32, i32) {
    %c0_i32 = arith.constant 0 : i32
    %c0_i32_0 = arith.constant 0 : i32
    %c0_i32_1 = arith.constant 0 : i32
    return %c0_i32, %c0_i32_0 : i32, i32
  }
  func.func @transform_5(%arg0: i32) -> (i32, i32) {
    %c0_i32 = arith.constant 0 : i32
    %c0_i32_0 = arith.constant 0 : i32
    %c0_i32_1 = arith.constant 0 : i32
    return %c0_i32, %c0_i32_0 : i32, i32
  }
  func.func @transform_6(%arg0: i32) -> (i32, i32) {
    %c0_i32 = arith.constant 0 : i32
    %c0_i32_0 = arith.constant 0 : i32
    %c0_i32_1 = arith.constant 0 : i32
    return %c0_i32, %c0_i32_0 : i32, i32
  }
  func.func @transform_7(%arg0: i32) -> (i32, i32) {
    %c0_i32 = arith.constant 0 : i32
    %c0_i32_0 = arith.constant 0 : i32
    return %arg0, %c0_i32 : i32, i32
  }
}

</mosaic_0001>

<bundles_post_ra>
// kernel: forward.1
= control target key start
LH: loop header
LB: loop body
LE: loop exit
PB: predicated region body
PF: predicated region fallthrough
CT: control target
= control target key end

     0   :  { %12 = vsyncpa [#allocation3], 0  ;;  %s825_s0 = inlined_call_operand.vmem [shape: s32[8,8], index: 0, kind: input, shape index: {}]   ;;  %s826_s1 = inlined_call_operand.vmem [shape: s32[8,8], index: 1, kind: input, shape index: {}]   ;;  %s827_s2 = inlined_call_operand.hbm [shape: f32[128,128], index: 2, kind: input, shape index: {}]   ;;  %s828_s3 = inlined_call_operand.hbm [shape: f32[128,128], index: 3, kind: input, shape index: {}]   ;;  %s829_s4 = inlined_call_operand.vmem [shape: f32[1,128], index: 4, kind: input, shape index: {}]   ;;  %s830_s5 = inlined_call_operand.hbm [shape: f32[128,128], index: 5, kind: input, shape index: {}]   ;;  %s831_s6 = inlined_call_operand.vmem [shape: f32[1,128], index: 6, kind: input, shape index: {}]   ;;  %s832_s7 = inlined_call_operand.vmem [shape: f32[8,128], index: 7, kind: output, shape index: {}]  }
   0x1   :  { %13 = vsyncpa [#allocation5], 0  ;;  %s35_s26 = sshll.u32 %s828_s3, 4  ;;  %s562_s27 = smov [#allocation4]   ;;  %s36_s26 = int_to_ptr.hbm [resolvable:$true] %s35_s26 }
   0x2   :  { %s37_s28 = sshll.u32 %s562_s27, 4  ;;  %s22_s8 = sshll.u32 %s827_s2, 4  ;;  %s38_s28 = int_to_ptr.vmem [resolvable:$true] %s37_s28  ;;  %s23_s8 = int_to_ptr.hbm [resolvable:$true] %s22_s8 }
   0x3   :  { %s563_s9 = smov 128   ;;  %s564_s10 = smov 8  }
   0x4   :  { %43 = dma.hbm_to_vmem [thread:$0]  %s36_s26, 2048, %s38_s28, [#allocation5], %s563_s9, %s563_s9, %s564_s10  }
   0x5   :  { %s565_s11 = smov [#allocation2]   ;;  %s50_s15 = sshll.u32 %s830_s5, 4  ;;  %s51_s15 = int_to_ptr.hbm [resolvable:$true] %s50_s15 }
   0x6   :  { %s24_s12 = sshll.u32 %s565_s11, 4  ;;  %s566_s3 = smov [#allocation6]   ;;  %s25_s12 = int_to_ptr.vmem [resolvable:$true] %s24_s12 }
   0x7   :  { %30 = dma.hbm_to_vmem [thread:$0]  %s23_s8, 2048, %s25_s12, [#allocation3], %s563_s9, %s563_s9, %s564_s10  }
   0x8   :  { %s52_s16 = sshll.u32 %s566_s3, 4  ;;  %s53_s16 = int_to_ptr.vmem [resolvable:$true] %s52_s16 }
   0x9   :  { %58 = dma.hbm_to_vmem [thread:$0]  %s51_s15, 2048, %s53_s16, [#allocation5], %s563_s9, %s563_s9, %s564_s10  }
   0xa   :  { %558 = dma.done.wait [#allocation3], 2048  }
   0xb   :  { %559 = vsyncadd [#allocation3], 4294965248 }
   0xc   :  { %560 = dma.done.wait [#allocation5], 4096  }
   0xd   :  { %561 = vsyncadd [#allocation5], 4294963200  ;;  %v567_v0 = vmov 3   ;;  %v568_v1 = vmov 2   ;;  %v569_v2 = vmov 6   ;;  %v73_v3 = vld [vmem:[%s825_s0] sm:$0xff]  ;;  %v91_v27 = vlaneseq }
   0xe   :  { %470 = vset.pattern.permute.xlu1 %v567_v0  ;;  %468 = vset.pattern.permute.xlu0 %v568_v1  ;;  %v631_v4 = vld [vmem:[#allocation2 + $0x78] sm:$0xff]  ;;  %v633_v5 = vld [vmem:[#allocation2 + $0x70] sm:$0xff]  ;;  %v636_v6 = vld [vmem:[#allocation2 + $0x68] sm:$0xff]  ;;  %v570_v9 = vmov 1   ;;  %v571_v11 = vmov 0   ;;  %v572_v13 = vmov 4  }
   0xf   :  { %472 = vset.pattern.permute.xlu2 %v569_v2  ;;  %191 = vperm.xlu1 %470, %v73_v3   ;;  %v642_v7 = vld [vmem:[#allocation2 + $0x60] sm:$0xff]  ;;  %v651_v8 = vld [vmem:[#allocation2 + $0x58] sm:$0xff]  ;;  %v658_v12 = vld [vmem:[#allocation2 + $0x50] sm:$0xff]  ;;  %v573_v18 = vmov 7   ;;  %v574_v20 = vmov 5   ;;  %v92_v29 = vand.u32 127, %v91_v27 }
  0x10   :  { %159 = vperm.xlu0 %468, %v73_v3   ;;  %287 = vperm.xlu2 %472, %v73_v3   ;;  %v74_v10 = vld [vmem:[%s826_s1] sm:$0xff]  ;;  %v662_v14 = vld [vmem:[#allocation2 + $0x48] sm:$0xff]  ;;  %v675_v17 = vld [vmem:[#allocation2 + $0x38] sm:$0xff]  ;;  %v575_v32 = vmov 1.0  }
  0x11   :  { %164 = vmatpush.msra.mxu2 %v631_v4  ;;  %99 = vmatpush.msra.mxu0 %v631_v4  ;;  %vm119_vm0 = vcmp.eq.s32.totalorder %v74_v10, 1  ;;  %v667_v15 = vld [vmem:[#allocation2 + $0x40] sm:$0xff]  ;;  %v683_v19 = vld [vmem:[#allocation2 + $0x30] sm:$0xff]  ;;  %v687_v21 = vld [vmem:[#allocation2 + $0x28] sm:$0xff] }
  0x12   :  { %132 = vmatpush.msra.mxu1 %v631_v4  ;;  %196 = vmatpush.msra.mxu3 %v631_v4  ;;  %v671_v16 = vsel %vm119_vm0, 1, %v571_v11  ;;  %v693_v22 = vld [vmem:[#allocation2 + $0x20] sm:$0xff]  ;;  %v699_v23 = vld [vmem:[#allocation2 + $0x18] sm:$0xff]  ;;  %v705_v24 = vld [vmem:[#allocation2 + $0x10] sm:$0xff] }
  0x13   :  { %165 = vmatpush.msra.mxu2 %v633_v5  ;;  %100 = vmatpush.msra.mxu0 %v633_v5  ;;  %v711_v25 = vld [vmem:[#allocation2 + $0x8] sm:$0xff]  ;;  %v717_v26 = vld [vmem:[#allocation2] sm:$0xff]  ;;  %v365_v38 = vld [vmem:[#allocation4 + $0x78] sm:$0xff] }
  0x14   :  { %133 = vmatpush.msra.mxu1 %v633_v5  ;;  %197 = vmatpush.msra.mxu3 %v633_v5  ;;  %v364_v39 = vld [vmem:[#allocation4 + $0x70] sm:$0xff]  ;;  %v363_v40 = vld [vmem:[#allocation4 + $0x68] sm:$0xff]  ;;  %v362_v41 = vld [vmem:[#allocation4 + $0x60] sm:$0xff] }
  0x15   :  { %166 = vmatpush.msra.mxu2 %v636_v6  ;;  %101 = vmatpush.msra.mxu0 %v636_v6  ;;  %v361_v42 = vld [vmem:[#allocation4 + $0x58] sm:$0xff]  ;;  %v360_v43 = vld [vmem:[#allocation4 + $0x50] sm:$0xff]  ;;  %v359_v44 = vld [vmem:[#allocation4 + $0x48] sm:$0xff] }
  0x16   :  { %134 = vmatpush.msra.mxu1 %v636_v6  ;;  %198 = vmatpush.msra.mxu3 %v636_v6  ;;  %v358_v45 = vld [vmem:[#allocation4 + $0x40] sm:$0xff]  ;;  %v357_v46 = vld [vmem:[#allocation4 + $0x38] sm:$0xff]  ;;  %v356_v47 = vld [vmem:[#allocation4 + $0x30] sm:$0xff] }
  0x17   :  { %167 = vmatpush.msra.mxu2 %v642_v7  ;;  %471 = vset.pattern.permute.xlu1 %v570_v9  ;;  %v355_v48 = vld [vmem:[#allocation4 + $0x28] sm:$0xff]  ;;  %v354_v49 = vld [vmem:[#allocation4 + $0x20] sm:$0xff]  ;;  %v353_v50 = vld [vmem:[#allocation4 + $0x18] sm:$0xff] }
  0x18   :  { %469 = vset.pattern.permute.xlu0 %v571_v11  ;;  %127 = vperm.xlu1 %471, %v73_v3   ;;  %v352_v51 = vld [vmem:[#allocation4 + $0x10] sm:$0xff]  ;;  %v351_v52 = vld [vmem:[#allocation4 + $0x8] sm:$0xff]  ;;  %v350_v53 = vld [vmem:[#allocation4] sm:$0xff] }
  0x19   :  { %94 = vperm.xlu0 %469, %v73_v3   ;;  %473 = vset.pattern.permute.xlu2 %v572_v13  ;;  %v406_v55 = vld [vmem:[#allocation6 + $0x78] sm:$0xff]  ;;  %v405_v56 = vld [vmem:[#allocation6 + $0x70] sm:$0xff]  ;;  %v404_v58 = vld [vmem:[#allocation6 + $0x68] sm:$0xff] }
  0x1a   :  { %168 = vmatpush.msra.mxu2 %v651_v8  ;;  %223 = vperm.xlu2 %473, %v73_v3   ;;  %v403_v59 = vld [vmem:[#allocation6 + $0x60] sm:$0xff]  ;;  %v402_v61 = vld [vmem:[#allocation6 + $0x58] sm:$0xff]  ;;  %v401_v62 = vld [vmem:[#allocation6 + $0x50] sm:$0xff] }
  0x1b   :  { %102 = vmatpush.msra.mxu0 %v642_v7  ;;  %135 = vmatpush.msra.mxu1 %v642_v7 }
  0x1c   :  { %169 = vmatpush.msra.mxu2 %v658_v12  ;;  %199 = vmatpush.msra.mxu3 %v642_v7 }
  0x1d   :  { %103 = vmatpush.msra.mxu0 %v651_v8  ;;  %136 = vmatpush.msra.mxu1 %v651_v8 }
  0x1e   :  { %170 = vmatpush.msra.mxu2 %v662_v14  ;;  %200 = vmatpush.msra.mxu3 %v651_v8 }
  0x1f   :  { %104 = vmatpush.msra.mxu0 %v658_v12  ;;  %137 = vmatpush.msra.mxu1 %v658_v12 }
  0x20   :  { %171 = vmatpush.msra.mxu2 %v667_v15  ;;  %474 = vset.pattern.permute.xlu1 %v573_v18 }
  0x21   :  { %122 = vperm.xlu0 %469, %v671_v16   ;;  %319 = vperm.xlu1 %474, %v73_v3  }
  0x22   :  { %172 = vmatpush.msra.mxu2 %v675_v17  ;;  %475 = vset.pattern.permute.xlu2 %v574_v20 }
  0x23   :  { %201 = vmatpush.msra.mxu3 %v658_v12  ;;  %255 = vperm.xlu2 %475, %v73_v3   ;;  %v399_v3 = vld [vmem:[#allocation6 + $0x40] sm:$0xff] }
  0x24   :  { %173 = vmatpush.msra.mxu2 %v683_v19  ;;  %105 = vmatpush.msra.mxu0 %v662_v14 }
  0x25   :  { %138 = vmatpush.msra.mxu1 %v662_v14  ;;  %202 = vmatpush.msra.mxu3 %v662_v14 }
  0x26   :  { %174 = vmatpush.msra.mxu2 %v687_v21  ;;  %106 = vmatpush.msra.mxu0 %v667_v15 }
  0x27   :  { %139 = vmatpush.msra.mxu1 %v667_v15  ;;  %203 = vmatpush.msra.mxu3 %v667_v15 }
  0x28   :  { %175 = vmatpush.msra.mxu2 %v693_v22  ;;  %107 = vmatpush.msra.mxu0 %v675_v17 }
  0x29   :  { %140 = vmatpush.msra.mxu1 %v675_v17  ;;  %204 = vmatpush.msra.mxu3 %v675_v17 }
  0x2a   :  { %176 = vmatpush.msra.mxu2 %v699_v23  ;;  %108 = vmatpush.msra.mxu0 %v683_v19 }
  0x2b   :  { %141 = vmatpush.msra.mxu1 %v683_v19  ;;  %205 = vmatpush.msra.mxu3 %v683_v19 }
  0x2c   :  { %177 = vmatpush.msra.mxu2 %v705_v24  ;;  %109 = vmatpush.msra.mxu0 %v687_v21 }
  0x2d   :  { %142 = vmatpush.msra.mxu1 %v687_v21  ;;  %206 = vmatpush.msra.mxu3 %v687_v21 }
  0x2e   :  { %178 = vmatpush.msra.mxu2 %v711_v25  ;;  %110 = vmatpush.msra.mxu0 %v693_v22 }
  0x2f   :  { %143 = vmatpush.msra.mxu1 %v693_v22  ;;  %207 = vmatpush.msra.mxu3 %v693_v22 }
  0x30   :  { %179 = vmatpush.msra.mxu2 %v717_v26  ;;  %111 = vmatpush.msra.mxu0 %v699_v23 }
  0x31   :  { %144 = vmatpush.msra.mxu1 %v699_v23  ;;  %208 = vmatpush.msra.mxu3 %v699_v23 }
  0x32   :  { %292 = vmatpush.msrb.mxu2 %v631_v4  ;;  %112 = vmatpush.msra.mxu0 %v705_v24 }
  0x33   :  { %145 = vmatpush.msra.mxu1 %v705_v24  ;;  %209 = vmatpush.msra.mxu3 %v705_v24 }
  0x34   :  { %293 = vmatpush.msrb.mxu2 %v633_v5  ;;  %113 = vmatpush.msra.mxu0 %v711_v25 }
  0x35   :  { %146 = vmatpush.msra.mxu1 %v711_v25  ;;  %210 = vmatpush.msra.mxu3 %v711_v25 }
  0x36   :  { %294 = vmatpush.msrb.mxu2 %v636_v6  ;;  %114 = vmatpush.msra.mxu0 %v717_v26 }
  0x37   :  { %147 = vmatpush.msra.mxu1 %v717_v26  ;;  %211 = vmatpush.msra.mxu3 %v717_v26 }
  0x38   :  { %295 = vmatpush.msrb.mxu2 %v642_v7  ;;  %228 = vmatpush.msrb.mxu0 %v631_v4 }
  0x39   :  { %260 = vmatpush.msrb.mxu1 %v631_v4  ;;  %324 = vmatpush.msrb.mxu3 %v631_v4 }
  0x3a   :  { %296 = vmatpush.msrb.mxu2 %v651_v8  ;;  %229 = vmatpush.msrb.mxu0 %v633_v5 }
  0x3b   :  { %261 = vmatpush.msrb.mxu1 %v633_v5  ;;  %325 = vmatpush.msrb.mxu3 %v633_v5 }
  0x3c   :  { %297 = vmatpush.msrb.mxu2 %v658_v12  ;;  %230 = vmatpush.msrb.mxu0 %v636_v6 }
  0x3d   :  { %262 = vmatpush.msrb.mxu1 %v636_v6  ;;  %326 = vmatpush.msrb.mxu3 %v636_v6 }
  0x3e   :  { %298 = vmatpush.msrb.mxu2 %v662_v14  ;;  %231 = vmatpush.msrb.mxu0 %v642_v7 }
  0x3f   :  { %263 = vmatpush.msrb.mxu1 %v642_v7  ;;  %327 = vmatpush.msrb.mxu3 %v642_v7 }
  0x40   :  { %299 = vmatpush.msrb.mxu2 %v667_v15  ;;  %232 = vmatpush.msrb.mxu0 %v651_v8 }
  0x41   :  { %264 = vmatpush.msrb.mxu1 %v651_v8  ;;  %328 = vmatpush.msrb.mxu3 %v651_v8 }
  0x42   :  { %300 = vmatpush.msrb.mxu2 %v675_v17  ;;  %233 = vmatpush.msrb.mxu0 %v658_v12 }
  0x43   :  { %265 = vmatpush.msrb.mxu1 %v658_v12  ;;  %329 = vmatpush.msrb.mxu3 %v658_v12  ;;  %v397_v12 = vld [vmem:[#allocation6 + $0x30] sm:$0xff] }
  0x44   :  { %301 = vmatpush.msrb.mxu2 %v683_v19  ;;  %234 = vmatpush.msrb.mxu0 %v662_v14 }
  0x45   :  { %266 = vmatpush.msrb.mxu1 %v662_v14  ;;  %330 = vmatpush.msrb.mxu3 %v662_v14 }
  0x46   :  { %302 = vmatpush.msrb.mxu2 %v687_v21  ;;  %235 = vmatpush.msrb.mxu0 %v667_v15 }
  0x47   :  { %267 = vmatpush.msrb.mxu1 %v667_v15  ;;  %331 = vmatpush.msrb.mxu3 %v667_v15  ;;  %v396_v15 = vld [vmem:[#allocation6 + $0x28] sm:$0xff] }
  0x48   :  { %303 = vmatpush.msrb.mxu2 %v693_v22  ;;  %236 = vmatpush.msrb.mxu0 %v675_v17 }
  0x49   :  { %268 = vmatpush.msrb.mxu1 %v675_v17  ;;  %332 = vmatpush.msrb.mxu3 %v675_v17 }
  0x4a   :  { %304 = vmatpush.msrb.mxu2 %v699_v23  ;;  %237 = vmatpush.msrb.mxu0 %v683_v19 }
  0x4b   :  { %269 = vmatpush.msrb.mxu1 %v683_v19  ;;  %333 = vmatpush.msrb.mxu3 %v683_v19 }
  0x4c   :  { %305 = vmatpush.msrb.mxu2 %v705_v24  ;;  %476 = vset.pattern.permute.xlu1 %v570_v9  ;;  %v398_v9 = vld [vmem:[#allocation6 + $0x38] sm:$0xff] }
  0x4d   :  { %238 = vmatpush.msrb.mxu0 %v687_v21  ;;  %270 = vmatpush.msrb.mxu1 %v687_v21 }
  0x4e   :  { %306 = vmatpush.msrb.mxu2 %v711_v25  ;;  %153 = vperm.xlu1 %476, %v671_v16  }
  0x4f   :  { %334 = vmatpush.msrb.mxu3 %v687_v21  ;;  %239 = vmatpush.msrb.mxu0 %v693_v22 }
  0x50   :  { %307 = vmatpush.msrb.mxu2 %v717_v26  ;;  %271 = vmatpush.msrb.mxu1 %v693_v22 }
  0x51   :  { %478 = vset.pattern.permute.xlu0 %v567_v0  ;;  %335 = vmatpush.msrb.mxu3 %v693_v22  ;;  %v400_v0 = vld [vmem:[#allocation6 + $0x48] sm:$0xff] }
  0x52   :  { %240 = vmatpush.msrb.mxu0 %v699_v23  ;;  %272 = vmatpush.msrb.mxu1 %v699_v23 }
  0x53   :  { %217 = vperm.xlu0 %478, %v671_v16   ;;  %336 = vmatpush.msrb.mxu3 %v699_v23  ;;  %v394_v23 = vld [vmem:[#allocation6 + $0x18] sm:$0xff] }
  0x54   :  { %241 = vmatpush.msrb.mxu0 %v705_v24  ;;  %273 = vmatpush.msrb.mxu1 %v705_v24 }
  0x55   :  { %477 = vset.pattern.permute.xlu2 %v568_v1  ;;  %337 = vmatpush.msrb.mxu3 %v705_v24 }
  0x56   :  { %242 = vmatpush.msrb.mxu0 %v711_v25  ;;  %274 = vmatpush.msrb.mxu1 %v711_v25 }
  0x57   :  { %479 = vset.pattern.permute.xlu1 %v572_v13  ;;  %338 = vmatpush.msrb.mxu3 %v711_v25 }
  0x58   :  { %249 = vperm.xlu1 %479, %v671_v16   ;;  %243 = vmatpush.msrb.mxu0 %v717_v26 }
  0x59   :  { %275 = vmatpush.msrb.mxu1 %v717_v26  ;;  %339 = vmatpush.msrb.mxu3 %v717_v26 }
  0x5a   :  { %185 = vperm.xlu2 %477, %v671_v16  }
  0x5b   :  { %483 = vset.pattern.permute.xlu0 %v573_v18 }
  0x60   :  { %481 = vset.pattern.permute.xlu1 %v569_v2 }
  0x61   :  { %313 = vperm.xlu1 %481, %v671_v16  }
  0x62   :  { %480 = vset.pattern.permute.xlu2 %v574_v20 }
  0x63   :  { %281 = vperm.xlu2 %480, %v671_v16  }
  0x6a   :  { %v288_v28 = vpop.permute.xlu2 %287 }
  0x6b   :  { %482 = vset.pattern.permute.xlu2 %v573_v18  ;;  %vm289_vm3 = vcmp.eq.s32.totalorder %v288_v28, %v92_v29  ;;  %v395_v18 = vld [vmem:[#allocation6 + $0x20] sm:$0xff] }
  0x6c   :  { %345 = vperm.xlu2 %482, %v671_v16  }
  0x74   :  { %v224_v33 = vpop.permute.xlu2 %223 }
  0x75   :  { %vm225_vm7 = vcmp.eq.s32.totalorder %v224_v33, %v92_v29 }
  0x7d   :  { %v256_v36 = vpop.permute.xlu2 %255 }
  0x7e   :  { %vm257_vm6 = vcmp.eq.s32.totalorder %v256_v36, %v92_v29  ;;  %v391_v36 = vld [vmem:[#allocation6] sm:$0xff] }
  0x81   :  { %v192_v30 = vpop.permute.xlu1 %191 }
  0x82   :  { %v160_v31 = vpop.permute.xlu0 %159  ;;  %vm193_vm1 = vcmp.eq.s32.totalorder %v192_v30, %v92_v29 }
  0x83   :  { %vm161_vm2 = vcmp.eq.s32.totalorder %v160_v31, %v92_v29  ;;  %445 = vmatmul.msk.f32.vlgmr.msra.gmra.mxu3 %vm193_vm1, %v575_v32 }
  0x84   :  { %443 = vmatmul.msk.f32.vlgmr.msra.gmra.mxu2 %vm161_vm2, %v575_v32 }
  0x8a   :  { %v128_v34 = vpop.permute.xlu1 %127 }
  0x8b   :  { %v95_v35 = vpop.permute.xlu0 %94  ;;  %vm129_vm4 = vcmp.eq.s32.totalorder %v128_v34, %v92_v29  ;;  %v393_v34 = vld [vmem:[#allocation6 + $0x10] sm:$0xff] }
  0x8c   :  { %vm96_vm5 = vcmp.eq.s32.totalorder %v95_v35, %v92_v29  ;;  %451 = vmatmul.msk.f32.vlgmr.msrb.gmra.mxu2 %vm289_vm3, %v575_v32  ;;  %441 = vmatmul.msk.f32.vlgmr.msra.gmra.mxu1 %vm129_vm4, %v575_v32  ;;  %v392_v35 = vld [vmem:[#allocation6 + $0x8] sm:$0xff] }
  0x8d   :  { %439 = vmatmul.msk.f32.vlgmr.msra.gmra.mxu0 %vm96_vm5, %v575_v32  ;;  %411 = vmatpush.msra.mxu1 %v406_v55 }
  0x8e   :  { %370 = vmatpush.msra.mxu0 %v365_v38 }
  0x8f   :  { %412 = vmatpush.msra.mxu1 %v405_v56 }
  0x90   :  { %371 = vmatpush.msra.mxu0 %v364_v39 }
  0x91   :  { %413 = vmatpush.msra.mxu1 %v404_v58 }
  0x92   :  { %372 = vmatpush.msra.mxu0 %v363_v40 }
  0x93   :  { %v320_v37 = vpop.permute.xlu1 %319  ;;  %v123_v60 = vpop.permute.xlu0 %122  ;;  %414 = vmatpush.msra.mxu1 %v403_v59 }
  0x94   :  { %vm321_vm8 = vcmp.eq.s32.totalorder %v320_v37, %v92_v29  ;;  %449 = vmatmul.msk.f32.vlgmr.msrb.gmra.mxu1 %vm257_vm6, %v575_v32  ;;  %373 = vmatpush.msra.mxu0 %v362_v41  ;;  %vm124_vm9 = vcmp.eq.s32.totalorder %v123_v60, 1  ;;  %v484_v37 = vld [vmem:[%s829_s4] ss:$0 sm:$0xff] }
  0x95   :  { %447 = vmatmul.msk.f32.vlgmr.msrb.gmra.mxu0 %vm225_vm7, %v575_v32  ;;  %453 = vmatmul.msk.f32.vlgmr.msrb.gmra.mxu3 %vm321_vm8, %v575_v32  ;;  %v485_v41 = vld [vmem:[%s831_s6] ss:$0 sm:$0xff] }
  0x96   :  { %374 = vmatpush.msra.mxu0 %v361_v42  ;;  %415 = vmatpush.msra.mxu1 %v402_v61 }
  0x98   :  { %375 = vmatpush.msra.mxu0 %v360_v43  ;;  %416 = vmatpush.msra.mxu1 %v401_v62 }
  0x9a   :  { %376 = vmatpush.msra.mxu0 %v359_v44  ;;  %417 = vmatpush.msra.mxu1 %v400_v0 }
  0x9c   :  { %377 = vmatpush.msra.mxu0 %v358_v45  ;;  %418 = vmatpush.msra.mxu1 %v399_v3 }
  0x9e   :  { %378 = vmatpush.msra.mxu0 %v357_v46  ;;  %419 = vmatpush.msra.mxu1 %v398_v9 }
  0xa0   :  { %379 = vmatpush.msra.mxu0 %v356_v47  ;;  %420 = vmatpush.msra.mxu1 %v397_v12 }
  0xa2   :  { %380 = vmatpush.msra.mxu0 %v355_v48  ;;  %421 = vmatpush.msra.mxu1 %v396_v15 }
  0xa4   :  { %381 = vmatpush.msra.mxu0 %v354_v49  ;;  %422 = vmatpush.msra.mxu1 %v395_v18 }
  0xa6   :  { %382 = vmatpush.msra.mxu0 %v353_v50  ;;  %423 = vmatpush.msra.mxu1 %v394_v23 }
  0xa8   :  { %383 = vmatpush.msra.mxu0 %v352_v51  ;;  %424 = vmatpush.msra.mxu1 %v393_v34 }
  0xaa   :  { %384 = vmatpush.msra.mxu0 %v351_v52  ;;  %425 = vmatpush.msra.mxu1 %v392_v35 }
  0xac   :  { %385 = vmatpush.msra.mxu0 %v350_v53  ;;  %426 = vmatpush.msra.mxu1 %v391_v36 }
  0xb4   :  { %v186_v57 = vpop.permute.xlu2 %185 }
  0xb5   :  { %vm187_vm11 = vcmp.eq.s32.totalorder %v186_v57, 1 }
  0xbd   :  { %v282_v2 = vpop.permute.xlu2 %281 }
  0xbe   :  { %vm283_vm15 = vcmp.eq.s32.totalorder %v282_v2, 1 }
  0xc0   :  { %v154_v54 = vpop.permute.xlu1 %153 }
  0xc1   :  { %vm155_vm10 = vcmp.eq.s32.totalorder %v154_v54, 1 }
  0xc5   :  { %v218_v6 = vpop.permute.xlu0 %217 }
  0xc6   :  { %vm219_vm12 = vcmp.eq.s32.totalorder %v218_v6, 1  ;;  %v346_v26 = vpop.permute.xlu2 %345 }
  0xc7   :  { %vm347_vm0 = vcmp.eq.s32.totalorder %v346_v26, 1 }
  0xca   :  { %v250_v63 = vpop.permute.xlu1 %249 }
  0xcb   :  { %vm251_vm13 = vcmp.eq.s32.totalorder %v250_v63, 1 }
  0xd3   :  { %v314_v17 = vpop.permute.xlu1 %313 }
  0xd4   :  { %vm315_vm14 = vcmp.eq.s32.totalorder %v314_v17, 1 }
 0x106   :  { %v213_v13 = vpop.f32.mrf.mxu3 }
 0x107   :  { %v181_v1 = vpop.f32.mrf.mxu2  ;;  %v220_v16 = vsel %vm219_vm12, %v213_v13, -10000.0 }
 0x108   :  { %v188_v11 = vsel %vm187_vm11, %v181_v1, -10000.0 }
 0x109   :  { %v149_v5 = vpop.f32.mrf.mxu1 }
 0x10a   :  { %v116_v4 = vpop.f32.mrf.mxu0  ;;  %v156_v8 = vsel %vm155_vm10, %v149_v5, -10000.0 }
 0x10b   :  { %v125_v7 = vsel %vm124_vm9, %v116_v4, -10000.0 }
 0x10c   :  { %v157_v10 = vmax.f32 %v125_v7, %v156_v8 }
 0x10e   :  { %v189_v14 = vmax.f32 %v157_v10, %v188_v11 }
 0x10f   :  { %v309_v24 = vpop.f32.mrf.mxu2 }
 0x110   :  { %v221_v19 = vmax.f32 %v189_v14, %v220_v16  ;;  %v316_v29 = vsel %vm315_vm14, %v309_v24, -10000.0 }
 0x111   :  { %v277_v21 = vpop.f32.mrf.mxu1 }
 0x112   :  { %v245_v20 = vpop.f32.mrf.mxu0  ;;  %v284_v27 = vsel %vm283_vm15, %v277_v21, -10000.0 }
 0x113   :  { %v252_v22 = vsel %vm251_vm13, %v245_v20, -10000.0 }
 0x114   :  { %v253_v25 = vmax.f32 %v221_v19, %v252_v22 }
 0x116   :  { %v285_v28 = vmax.f32 %v253_v25, %v284_v27 }
 0x118   :  { %v317_v30 = vmax.f32 %v285_v28, %v316_v29  ;;  %v341_v31 = vpop.f32.mrf.mxu3 }
 0x119   :  { %v348_v32 = vsel %vm347_vm0, %v341_v31, -10000.0 }
 0x11a   :  { %v349_v33 = vmax.f32 %v317_v30, %v348_v32 }
 0x11c   :  { %386 = vmatmul.f32.vlgmr.msra.gmra.mxu0 %v349_v33 }
 0x199   :  { %v387_v38 = vpop.f32.mrf.mxu0 }
 0x19a   :  { %v388_v39 = vadd.f32 %v484_v37, %v387_v38 }
 0x19c   :  { %v390_v40 = vmax.f32 %v388_v39, 0.0 }
 0x19e   :  { %427 = vmatmul.f32.vlgmr.msra.gmra.mxu1 %v390_v40 }
 0x21b   :  { %v428_v42 = vpop.f32.mrf.mxu1 }
 0x21c   :  { %v429_v43 = vadd.f32 %v485_v41, %v428_v42 }
 0x21e   :  { %431 = vst [vmem:[%s832_s7] sm:$0xff] %v429_v43 }
 0x21f   :  { %436 = vsyncpa [#allocation3], 1 }
 0x220   :  { %437 = vsyncpa [#allocation5], 1 }

</bundles_post_ra>
